<compile_context>
chip_gen: v5e
topology: v5e:2x2
jax: 0.10.0
libtpu: 0.0.40
codegen_flags: <defaults>
</compile_context>

<pallas_src>
from functools import partial

import jax
import jax.numpy as jnp
from jax.experimental import pallas as pl
from jax.experimental.pallas import tpu as pltpu

DAN_CELLS = 10
MBON_CELLS = 10
LANES = 128


def _round_up(x, m):
    return (x + m - 1) // m * m


# ---------------------------------------------------------------------------
# Kernel A: single step (== MBONCell.forward), gridless, one packed input slab.
# ---------------------------------------------------------------------------
def mbon_step_kernel(dt_tau_ref, slab_ref, out_ref, *, B, K, DP,
                     r_state, r_bias, r_danw, r_kcw, r_kcin, r_danin):
    dt_tau = dt_tau_ref[0]                                   # runtime SMEM scalar

    # Static, 8-aligned slices of the single packed slab (one input DMA total).
    state = slab_ref[r_state:r_state + B, :]                 # (B, 128)  M on lanes
    bias = slab_ref[r_bias:r_bias + 1, :]                    # (1, 128)
    dan_w = slab_ref[r_danw:r_danw + DP, :]                  # (DP, 128)
    kc_w = slab_ref[r_kcw:r_kcw + B * K, :].reshape(B, K, LANES)
    kc_in = slab_ref[r_kcin:r_kcin + B * K, :].reshape(B, K, LANES)
    dan_in = slab_ref[r_danin:r_danin + B * DP, :].reshape(B, DP, LANES)

    # Contractions on VPU (multiply) + XLU (sublane reduce); M stays lane-dense.
    kc_value = jnp.sum(kc_in * kc_w, axis=1)                 # (B, 128)
    dan_value = jnp.sum(dan_in * dan_w[None, :, :], axis=1)  # (B, 128)

    dan_mod = 0.5 * (jnp.tanh(0.5 * dan_value) + 1.0)        # sigmoid via one EUP tanh
    kc_act = jnp.maximum(kc_value + bias, 0.0)               # relu(kc_value + bias)

    # Lane-dense (B, 128) store; padded lanes are exactly 0 by construction.
    out_ref[...] = state * (1.0 - dt_tau) + dt_tau * dan_mod * kc_act


def mbon_cell_forward(state, kc_weights, kc_inputs, dan_inputs,
                      dan_weight, bias, dt, tau):
    """One MBONCell.forward step.  Returns state_plus_1 of shape (B, M)."""
    B, M = state.shape
    K = kc_weights.shape[1]
    D = dan_weight.shape[0]
    DP = _round_up(D, 8)
    assert kc_weights.shape == (B, K, M) and dan_weight.shape == (D, M)
    assert K % 8 == 0 and (B * K) % 8 == 0, "packing assumes 8-aligned K and B*K"

    f32 = jnp.float32
    # Row offsets, all multiples of 8 -> in-kernel slices/reshapes stay tile aligned.
    r_state = 0
    r_bias = r_state + _round_up(B, 8)
    r_danw = r_bias + 8
    r_kcw = r_danw + DP
    r_kcin = r_kcw + B * K
    r_danin = r_kcin + B * K
    rows_total = r_danin + B * DP

    # Pack the six operands into one lane-dense f32 slab (layout plumbing only).
    slab = jnp.zeros((rows_total, LANES), f32)
    slab = slab.at[r_state:r_state + B, :M].set(state.astype(f32))
    slab = slab.at[r_bias, :M].set(bias.astype(f32))
    slab = slab.at[r_danw:r_danw + D, :M].set(dan_weight.astype(f32))
    slab = slab.at[r_kcw:r_kcw + B * K, :M].set(
        kc_weights.astype(f32).reshape(B * K, M))
    slab = slab.at[r_kcin:r_kcin + B * K, :].set(
        jnp.broadcast_to(kc_inputs.astype(f32).reshape(B * K, 1), (B * K, LANES)))
    dan_in_b = jnp.zeros((B, DP, LANES), f32).at[:, :D, :].set(
        jnp.broadcast_to(dan_inputs.astype(f32)[:, :, None], (B, D, LANES)))
    slab = slab.at[r_danin:r_danin + B * DP, :].set(dan_in_b.reshape(B * DP, LANES))

    dt_tau = jnp.asarray([dt / tau], dtype=f32)              # runtime SMEM scalar

    out = pl.pallas_call(
        partial(mbon_step_kernel, B=B, K=K, DP=DP,
                r_state=r_state, r_bias=r_bias, r_danw=r_danw,
                r_kcw=r_kcw, r_kcin=r_kcin, r_danin=r_danin),
        out_shape=jax.ShapeDtypeStruct((B, LANES), f32),
        in_specs=[pl.BlockSpec(memory_space=pltpu.MemorySpace.SMEM),
                  pl.BlockSpec(memory_space=pltpu.MemorySpace.VMEM)],
        out_specs=pl.BlockSpec(memory_space=pltpu.MemorySpace.VMEM),
    )(dt_tau, slab)
    return out[:, :M]


# ---------------------------------------------------------------------------
# Kernel B: fused T-step recurrence.  grid=(T,), weights resident in VMEM,
# per-step inputs streamed, state kept in a VMEM scratch accumulator.
# ---------------------------------------------------------------------------
def mbon_seq_kernel(dt_tau_ref, kc_in_ref, dan_in_ref, kc_wT_ref, dan_wT_ref,
                    bias_ref, state0_ref, out_ref, state_acc):
    t = pl.program_id(0)
    dt_tau = dt_tau_ref[0]

    @pl.when(t == 0)
    def _():
        state_acc[...] = state0_ref[...]

    kc_in = kc_in_ref[0]                                     # (B, K)  this timestep
    dan_in = dan_in_ref[0]                                   # (B, D)  this timestep
    kc_wT = kc_wT_ref[...]                                   # (B, M, K)  K on lanes
    dan_wT = dan_wT_ref[...]                                 # (M, D)     D on lanes
    bias = bias_ref[...]                                     # (1, M)

    # Lane-axis reduces on VPU+XLU (MXU would be <1% utilized at these sizes).
    kc_value = jnp.sum(kc_in[:, None, :] * kc_wT, axis=-1)                  # (B, M)
    dan_value = jnp.sum(dan_in[:, None, :] * dan_wT[None, :, :], axis=-1)   # (B, M)
    dan_mod = 0.5 * (jnp.tanh(0.5 * dan_value) + 1.0)
    kc_act = jnp.maximum(kc_value + bias, 0.0)

    state_acc[...] = state_acc[...] * (1.0 - dt_tau) + dt_tau * dan_mod * kc_act

    @pl.when(t == pl.num_programs(0) - 1)
    def _():
        out_ref[...] = state_acc[...]                        # single write-back


def mbon_cell_sequence(state, kc_weights, kc_inputs_seq, dan_inputs_seq,
                       dan_weight, bias, dt, tau):
    """Applies MBONCell.forward once per timestep of the input sequences
    (kc_inputs_seq: (T,B,K), dan_inputs_seq: (T,B,D)) in ONE pallas_call.
    Returns the final state (B, M)."""
    T, B, K = kc_inputs_seq.shape
    M = state.shape[1]
    D = dan_weight.shape[0]
    f32 = jnp.float32

    kc_wT = jnp.transpose(kc_weights.astype(f32), (0, 2, 1))   # (B, M, K)
    dan_wT = jnp.transpose(dan_weight.astype(f32), (1, 0))     # (M, D)
    bias2d = bias.astype(f32).reshape(1, M)
    dt_tau = jnp.asarray([dt / tau], dtype=f32)

    return pl.pallas_call(
        mbon_seq_kernel,
        out_shape=jax.ShapeDtypeStruct((B, M), f32),
        grid=(T,),
        in_specs=[
            pl.BlockSpec(memory_space=pltpu.MemorySpace.SMEM),   # dt/tau scalar
            pl.BlockSpec((1, B, K), lambda t: (t, 0, 0)),        # streamed per step
            pl.BlockSpec((1, B, D), lambda t: (t, 0, 0)),        # streamed per step
            pl.BlockSpec((B, M, K), lambda t: (0, 0, 0)),        # resident weights
            pl.BlockSpec((M, D), lambda t: (0, 0)),              # resident weights
            pl.BlockSpec((1, M), lambda t: (0, 0)),              # resident bias
            pl.BlockSpec((B, M), lambda t: (0, 0)),              # initial state
        ],
        out_specs=pl.BlockSpec((B, M), lambda t: (0, 0)),
        scratch_shapes=[pltpu.VMEM((B, M), f32)],                # state accumulator
        compiler_params=pltpu.CompilerParams(
            dimension_semantics=("arbitrary",)),                 # sequential recurrence
    )(dt_tau, kc_inputs_seq.astype(f32), dan_inputs_seq.astype(f32),
      kc_wT, dan_wT, bias2d, state.astype(f32))


# ---------------------------------------------------------------------------
# Pure-JAX references.
# ---------------------------------------------------------------------------
def mbon_cell_reference(state, kc_weights, kc_inputs, dan_inputs,
                        dan_weight, bias, dt, tau):
    dt_tau = dt / tau
    kc_value = jnp.squeeze(jnp.matmul(kc_inputs[:, None, :], kc_weights), axis=1)
    dan_mod = jax.nn.sigmoid(jnp.matmul(dan_inputs, dan_weight))
    return state * (1.0 - dt_tau) + dt_tau * dan_mod * jax.nn.relu(kc_value + bias)


def mbon_sequence_reference(state, kc_weights, kc_seq, dan_seq,
                            dan_weight, bias, dt, tau):
    for t in range(kc_seq.shape[0]):
        state = mbon_cell_reference(state, kc_weights, kc_seq[t], dan_seq[t],
                                    dan_weight, bias, dt, tau)
    return state


if __name__ == "__main__":
    B = 4          # batch
    K = 32         # KC (Kenyon cell) input dimension
    T = 8          # timesteps for the fused-sequence kernel
    tau = 5.0
    dt = 0.5

    key = jax.random.PRNGKey(0)
    ks = jax.random.split(key, 8)

    # Deterministic parameter init matching Normal(0, 0.5) of the module __init__.
    dan_weight = 0.5 * jax.random.normal(ks[0], (DAN_CELLS, MBON_CELLS), jnp.float32)
    bias = 0.5 * jax.random.normal(ks[1], (MBON_CELLS,), jnp.float32)

    # Example forward inputs.
    state = jax.random.normal(ks[2], (B, MBON_CELLS), jnp.float32)
    kc_weights = jax.random.normal(ks[3], (B, K, MBON_CELLS), jnp.float32)
    kc_inputs = jax.random.normal(ks[4], (B, K), jnp.float32)
    dan_inputs = jax.random.normal(ks[5], (B, DAN_CELLS), jnp.float32)

    # Per-timestep input sequences for the fused recurrence.
    kc_inputs_seq = jax.random.normal(ks[6], (T, B, K), jnp.float32)
    dan_inputs_seq = jax.random.normal(ks[7], (T, B, DAN_CELLS), jnp.float32)

    # Single step (== module.forward).
    out = mbon_cell_forward(state, kc_weights, kc_inputs, dan_inputs,
                            dan_weight, bias, dt, tau)
    out = jax.block_until_ready(out)
    ref = mbon_cell_reference(state, kc_weights, kc_inputs, dan_inputs,
                              dan_weight, bias, dt, tau)
    assert out.shape == (B, MBON_CELLS)
    assert jnp.allclose(out, ref, atol=1e-5, rtol=1e-5), "mismatch vs reference (1 step)"

    # Fused T-step recurrence (one gridded, pipelined pallas_call).
    out_seq = mbon_cell_sequence(state, kc_weights, kc_inputs_seq, dan_inputs_seq,
                                 dan_weight, bias, dt, tau)
    out_seq = jax.block_until_ready(out_seq)
    ref_seq = mbon_sequence_reference(state, kc_weights, kc_inputs_seq, dan_inputs_seq,
                                      dan_weight, bias, dt, tau)
    assert out_seq.shape == (B, MBON_CELLS)
    assert jnp.allclose(out_seq, ref_seq, atol=1e-4, rtol=1e-5), "mismatch vs reference (sequence)"

    print("KERNEL_OK")
</pallas_src>

<mosaic_0001>
module attributes {stable_mosaic.version = 11 : i64} {
  func.func @mbon_step_kernel(%arg0: memref<1xf32, #tpu.memory_space<smem>>, %arg1: memref<352x128xf32, #tpu.memory_space<vmem>>, %arg2: memref<4x128xf32, #tpu.memory_space<vmem>>) attributes {dimension_semantics = [], scalar_prefetch = 0 : i64, scratch_operands = 0 : i64, tpu.core_type = #tpu.core_type<tc>} {
    %c0 = arith.constant 0 : index
    %0 = memref.load %arg0[%c0] : memref<1xf32, #tpu.memory_space<smem>>
    %c0_0 = arith.constant 0 : index
    %c0_1 = arith.constant 0 : index
    %1 = vector.load %arg1[%c0_0, %c0_1] : memref<352x128xf32, #tpu.memory_space<vmem>>, vector<4x128xf32>
    %c8 = arith.constant 8 : index
    %c0_2 = arith.constant 0 : index
    %2 = vector.load %arg1[%c8, %c0_2] : memref<352x128xf32, #tpu.memory_space<vmem>>, vector<1x128xf32>
    %c16 = arith.constant 16 : index
    %c0_3 = arith.constant 0 : index
    %3 = vector.load %arg1[%c16, %c0_3] : memref<352x128xf32, #tpu.memory_space<vmem>>, vector<16x128xf32>
    %c32 = arith.constant 32 : index
    %c0_4 = arith.constant 0 : index
    %4 = vector.load %arg1[%c32, %c0_4] : memref<352x128xf32, #tpu.memory_space<vmem>>, vector<128x128xf32>
    %5 = vector.shape_cast %4 : vector<128x128xf32> to vector<4x32x128xf32>
    %c160 = arith.constant 160 : index
    %c0_5 = arith.constant 0 : index
    %6 = vector.load %arg1[%c160, %c0_5] : memref<352x128xf32, #tpu.memory_space<vmem>>, vector<128x128xf32>
    %7 = vector.shape_cast %6 : vector<128x128xf32> to vector<4x32x128xf32>
    %c288 = arith.constant 288 : index
    %c0_6 = arith.constant 0 : index
    %8 = vector.load %arg1[%c288, %c0_6] : memref<352x128xf32, #tpu.memory_space<vmem>>, vector<64x128xf32>
    %9 = vector.shape_cast %8 : vector<64x128xf32> to vector<4x16x128xf32>
    %10 = arith.mulf %7, %5 : vector<4x32x128xf32>
    %cst = arith.constant dense<0.000000e+00> : vector<4x128xf32>
    %11 = vector.multi_reduction <add>, %10, %cst [1] : vector<4x32x128xf32> to vector<4x128xf32>
    %12 = vector.shape_cast %3 : vector<16x128xf32> to vector<1x16x128xf32>
    %13 = vector.broadcast %12 : vector<1x16x128xf32> to vector<4x16x128xf32>
    %14 = arith.mulf %9, %13 : vector<4x16x128xf32>
    %cst_7 = arith.constant dense<0.000000e+00> : vector<4x128xf32>
    %15 = vector.multi_reduction <add>, %14, %cst_7 [1] : vector<4x16x128xf32> to vector<4x128xf32>
    %cst_8 = arith.constant 5.000000e-01 : f32
    %16 = vector.broadcast %cst_8 : f32 to vector<4x128xf32>
    %17 = arith.mulf %16, %15 : vector<4x128xf32>
    %18 = math.tanh %17 : vector<4x128xf32>
    %cst_9 = arith.constant 1.000000e+00 : f32
    %19 = vector.broadcast %cst_9 : f32 to vector<4x128xf32>
    %20 = arith.addf %18, %19 : vector<4x128xf32>
    %cst_10 = arith.constant 5.000000e-01 : f32
    %21 = vector.broadcast %cst_10 : f32 to vector<4x128xf32>
    %22 = arith.mulf %21, %20 : vector<4x128xf32>
    %23 = vector.broadcast %2 : vector<1x128xf32> to vector<4x128xf32>
    %24 = arith.addf %11, %23 : vector<4x128xf32>
    %cst_11 = arith.constant 0.000000e+00 : f32
    %25 = vector.broadcast %cst_11 : f32 to vector<4x128xf32>
    %26 = arith.maximumf %24, %25 : vector<4x128xf32>
    %cst_12 = arith.constant 1.000000e+00 : f32
    %27 = arith.subf %cst_12, %0 : f32
    %28 = vector.broadcast %27 : f32 to vector<4x128xf32>
    %29 = arith.mulf %1, %28 : vector<4x128xf32>
    %30 = vector.broadcast %0 : f32 to vector<4x128xf32>
    %31 = arith.mulf %30, %22 : vector<4x128xf32>
    %32 = arith.mulf %31, %26 : vector<4x128xf32>
    %33 = arith.addf %29, %32 : vector<4x128xf32>
    %c0_13 = arith.constant 0 : index
    %c0_14 = arith.constant 0 : index
    %34 = vector.load %arg2[%c0_13, %c0_14] : memref<4x128xf32, #tpu.memory_space<vmem>>, vector<4x128xf32>
    tpu.vector_store %arg2[%c0_13, %c0_14], %33 {strides = array<i32>} : memref<4x128xf32, #tpu.memory_space<vmem>>, vector<4x128xf32>,
    return
  }
}

</mosaic_0001>

<bundles_post_ra>
// kernel: tpu_custom_call.1
= control target key start
LH: loop header
LB: loop body
LE: loop exit
PB: predicated region body
PF: predicated region fallthrough
CT: control target
= control target key end

     0   :  { %8 = vsyncpa [#allocation4], 0  ;;  %s328_s0 = inlined_call_operand.<no memory space> [shape: f32[1], index: 0, kind: input, shape index: {}]   ;;  %s329_s1 = inlined_call_operand.hbm [shape: f32[352,128], index: 1, kind: input, shape index: {}]   ;;  %s330_s2 = inlined_call_operand.hbm [shape: f32[4,128], index: 2, kind: output, shape index: {}]  }
   0x1   :  { %9 = vsyncpa [#allocation5], 0  ;;  %s16_s11 = sshll.u32 %s329_s1, 4  ;;  %s297_s12 = smov [#allocation3]   ;;  %s17_s11 = int_to_ptr.hbm [resolvable:$true] %s16_s11 }
   0x2   :  { %s18_s13 = sshll.u32 %s297_s12, 4  ;;  %s298_s14 = smov 128   ;;  %s19_s13 = int_to_ptr.vmem [resolvable:$true] %s18_s13 }
   0x3   :  { %s299_s15 = smov 8  }
   0x4   :  { %24 = dma.hbm_to_vmem [thread:$0]  %s17_s11, 5632, %s19_s13, [#allocation4], %s298_s14, %s298_s14, %s299_s15  }
   0x5   :  { %293 = dma.done.wait [#allocation4], 5632  }
   0x6   :  { %294 = vsyncadd [#allocation4], 4294961664  ;;  %v34_v0 = vld [vmem:[#allocation3 + $0x20] sm:$0xff]  ;;  %v35_v1 = vld [vmem:[#allocation3 + $0x28] sm:$0xff]  ;;  %s187_s19 = ssub.f32 1.0, %s328_s0  ;;  %vm204_vm0 = vcmask 1041409  }
   0x7   :  { %v36_v2 = vld [vmem:[#allocation3 + $0x30] sm:$0xff]  ;;  %v37_v3 = vld [vmem:[#allocation3 + $0x38] sm:$0xff]  ;;  %v38_v4 = vld [vmem:[#allocation3 + $0x40] sm:$0xff]  ;;  %vm207_vm1 = vcmask 1042434   ;;  %vm210_vm2 = vcmask 1043459   ;;  %s222_s23 = sshll.u32 %s330_s2, 4  ;;  %s223_s23 = int_to_ptr.hbm [resolvable:$true] %s222_s23 }
   0x8   :  { %v39_v5 = vld [vmem:[#allocation3 + $0x48] sm:$0xff]  ;;  %v40_v6 = vld [vmem:[#allocation3 + $0x50] sm:$0xff]  ;;  %v41_v7 = vld [vmem:[#allocation3 + $0x58] sm:$0xff] }
   0x9   :  { %v42_v8 = vld [vmem:[#allocation3 + $0x60] sm:$0xff]  ;;  %v43_v9 = vld [vmem:[#allocation3 + $0x68] sm:$0xff]  ;;  %v44_v10 = vld [vmem:[#allocation3 + $0x70] sm:$0xff] }
   0xa   :  { %v45_v11 = vld [vmem:[#allocation3 + $0x78] sm:$0xff]  ;;  %v46_v12 = vld [vmem:[#allocation3 + $0x80] sm:$0xff]  ;;  %v47_v14 = vld [vmem:[#allocation3 + $0x88] sm:$0xff] }
   0xb   :  { %v50_v13 = vld [vmem:[#allocation3 + $0xa0] sm:$0xff]  ;;  %v48_v15 = vld [vmem:[#allocation3 + $0x90] sm:$0xff]  ;;  %v49_v16 = vld [vmem:[#allocation3 + $0x98] sm:$0xff] }
   0xc   :  { %v51_v17 = vld [vmem:[#allocation3 + $0xa8] sm:$0xff]  ;;  %v52_v18 = vld [vmem:[#allocation3 + $0xb0] sm:$0xff]  ;;  %v53_v19 = vld [vmem:[#allocation3 + $0xb8] sm:$0xff]  ;;  %v74_v20 = vmul.f32 %v50_v13, %v34_v0 }
   0xd   :  { %v54_v21 = vld [vmem:[#allocation3 + $0xc0] sm:$0xff]  ;;  %v55_v22 = vld [vmem:[#allocation3 + $0xc8] sm:$0xff]  ;;  %v56_v23 = vld [vmem:[#allocation3 + $0xd0] sm:$0xff]  ;;  %v75_v24 = vmul.f32 %v51_v17, %v35_v1  ;;  %v76_v25 = vmul.f32 %v52_v18, %v36_v2  ;;  %v77_v31 = vmul.f32 %v53_v19, %v37_v3 }
   0xe   :  { %v32_v26 = vld [vmem:[#allocation3 + $0x10] sm:$0xff]  ;;  %v33_v27 = vld [vmem:[#allocation3 + $0x18] sm:$0xff]  ;;  %v58_v29 = vld [vmem:[#allocation3 + $0xe0] sm:$0xff]  ;;  %v78_v32 = vmul.f32 %v54_v21, %v38_v4  ;;  %v79_v33 = vmul.f32 %v55_v22, %v39_v5  ;;  %v80_v34 = vmul.f32 %v56_v23, %v40_v6 }
   0xf   :  { %v57_v28 = vld [vmem:[#allocation3 + $0xd8] sm:$0xff]  ;;  %v59_v30 = vld [vmem:[#allocation3 + $0xe8] sm:$0xff]  ;;  %v60_v35 = vld [vmem:[#allocation3 + $0xf0] sm:$0xff]  ;;  %v82_v39 = vmul.f32 %v58_v29, %v42_v8  ;;  %v90_v41 = vadd.f32 %v75_v24, %v74_v20 }
  0x10   :  { %v61_v36 = vld [vmem:[#allocation3 + $0xf8] sm:$0xff]  ;;  %v62_v37 = vld [vmem:[#allocation3 + $0x100] sm:$0xff]  ;;  %v81_v38 = vmul.f32 %v57_v28, %v41_v7  ;;  %v83_v40 = vmul.f32 %v59_v30, %v43_v9  ;;  %v63_v42 = vld [vmem:[#allocation3 + $0x108] sm:$0xff]  ;;  %v84_v45 = vmul.f32 %v60_v35, %v44_v10  ;;  %v99_v48 = vadd.f32 %v79_v33, %v78_v32 }
  0x11   :  { %v64_v43 = vld [vmem:[#allocation3 + $0x110] sm:$0xff]  ;;  %v65_v44 = vld [vmem:[#allocation3 + $0x118] sm:$0xff]  ;;  %v85_v46 = vmul.f32 %v61_v36, %v45_v11  ;;  %v86_v47 = vmul.f32 %v62_v37, %v46_v12  ;;  %v66_v49 = vld [vmem:[#allocation3 + $0x120] sm:$0xff]  ;;  %v87_v52 = vmul.f32 %v63_v42, %v47_v14  ;;  %v91_v55 = vadd.f32 %v90_v41, %v76_v25 }
  0x12   :  { %v67_v50 = vld [vmem:[#allocation3 + $0x128] sm:$0xff]  ;;  %v68_v51 = vld [vmem:[#allocation3 + $0x130] sm:$0xff]  ;;  %v88_v53 = vmul.f32 %v64_v43, %v48_v15  ;;  %v89_v54 = vmul.f32 %v65_v44, %v49_v16  ;;  %v69_v56 = vld [vmem:[#allocation3 + $0x138] sm:$0xff]  ;;  %v100_v59 = vadd.f32 %v99_v48, %v80_v34  ;;  %v108_v60 = vadd.f32 %v83_v40, %v82_v39 }
  0x13   :  { %v70_v57 = vld [vmem:[#allocation3 + $0x140] sm:$0xff]  ;;  %v71_v58 = vld [vmem:[#allocation3 + $0x148] sm:$0xff]  ;;  %v126_v61 = vmul.f32 %v66_v49, %v32_v26  ;;  %v127_v62 = vmul.f32 %v67_v50, %v33_v27  ;;  %v72_v63 = vld [vmem:[#allocation3 + $0x150] sm:$0xff]  ;;  %v92_v1 = vadd.f32 %v91_v55, %v77_v31  ;;  %v117_v2 = vadd.f32 %v87_v52, %v86_v47 }
  0x14   :  { %v73_v0 = vld [vmem:[#allocation3 + $0x158] sm:$0xff]  ;;  %v128_v3 = vmul.f32 %v68_v51, %v32_v26  ;;  %v129_v4 = vmul.f32 %v69_v56, %v33_v27  ;;  %v101_v5 = vadd.f32 %v100_v59, %v81_v38  ;;  %v109_v6 = vadd.f32 %v108_v60, %v84_v45 }
  0x15   :  { %v130_v7 = vmul.f32 %v70_v57, %v32_v26  ;;  %v131_v8 = vmul.f32 %v71_v58, %v33_v27  ;;  %v93_v9 = vrot.slane %v92_v1, 4  ;;  %v118_v10 = vadd.f32 %v117_v2, %v88_v53 }
  0x16   :  { %v132_v11 = vmul.f32 %v72_v63, %v32_v26  ;;  %v133_v12 = vmul.f32 %v73_v0, %v33_v27  ;;  %v102_v13 = vrot.slane %v101_v5, 4  ;;  %v110_v14 = vadd.f32 %v109_v6, %v85_v46 }
  0x17   :  { %v134_v15 = vadd.f32 %v127_v62, %v126_v61  ;;  %v141_v16 = vadd.f32 %v129_v4, %v128_v3  ;;  %v94_v17 = vadd.f32 %v93_v9, %v92_v1  ;;  %v119_v18 = vadd.f32 %v118_v10, %v89_v54  ;;  %v236_v4 = vld [vmem:[#allocation3 + $0x8] ss:$0 sm:$0xff] }
  0x18   :  { %v148_v19 = vadd.f32 %v131_v8, %v130_v7  ;;  %v155_v20 = vadd.f32 %v133_v12, %v132_v11  ;;  %v103_v21 = vadd.f32 %v102_v13, %v101_v5  ;;  %v111_v22 = vrot.slane %v110_v14, 4 }
  0x19   :  { %v135_v23 = vrot.slane %v134_v15, 4  ;;  %v142_v24 = vrot.slane %v141_v16, 4  ;;  %v120_v25 = vrot.slane %v119_v18, 4  ;;  %v95_v34 = vrot.slane %v94_v17, 2 }
  0x1a   :  { %v149_v28 = vrot.slane %v148_v19, 4  ;;  %v156_v29 = vrot.slane %v155_v20, 4  ;;  %v112_v30 = vadd.f32 %v111_v22, %v110_v14  ;;  %v104_v35 = vrot.slane %v103_v21, 2 }
  0x1b   :  { %v136_v31 = vadd.f32 %v135_v23, %v134_v15  ;;  %v143_v32 = vadd.f32 %v142_v24, %v141_v16  ;;  %v121_v26 = vadd.f32 %v120_v25, %v119_v18  ;;  %v96_v46 = vadd.f32 %v95_v34, %v94_v17 }
  0x1c   :  { %v150_v27 = vadd.f32 %v149_v28, %v148_v19  ;;  %v157_v33 = vadd.f32 %v156_v29, %v155_v20  ;;  %v113_v38 = vrot.slane %v112_v30, 2  ;;  %v105_v47 = vadd.f32 %v104_v35, %v103_v21 }
  0x1d   :  { %v137_v36 = vrot.slane %v136_v31, 2  ;;  %v144_v37 = vrot.slane %v143_v32, 2  ;;  %v122_v41 = vrot.slane %v121_v26, 2  ;;  %v97_v58 = vrot.slane %v96_v46, 1 }
  0x1e   :  { %v151_v39 = vrot.slane %v150_v27, 2  ;;  %v158_v40 = vrot.slane %v157_v33, 2  ;;  %v114_v50 = vadd.f32 %v113_v38, %v112_v30  ;;  %v106_v59 = vrot.slane %v105_v47, 1 }
  0x1f   :  { %v138_v42 = vadd.f32 %v137_v36, %v136_v31  ;;  %v145_v43 = vadd.f32 %v144_v37, %v143_v32  ;;  %v123_v53 = vadd.f32 %v122_v41, %v121_v26  ;;  %v98_v2 = vadd.f32 %v97_v58, %v96_v46  ;;  %v30_v26 = vld [vmem:[#allocation3] sm:$0xf] }
  0x20   :  { %v152_v44 = vadd.f32 %v151_v39, %v150_v27  ;;  %v159_v45 = vadd.f32 %v158_v40, %v157_v33  ;;  %v115_v62 = vrot.slane %v114_v50, 1  ;;  %v107_v3 = vadd.f32 %v106_v59, %v105_v47 }
  0x21   :  { %v139_v48 = vrot.slane %v138_v42, 1  ;;  %v146_v49 = vrot.slane %v145_v43, 1  ;;  %v124_v1 = vrot.slane %v123_v53, 1  ;;  %v179_v8 = vadd.f32 %v236_v4, %v98_v2 }
  0x22   :  { %v153_v51 = vrot.slane %v152_v44, 1  ;;  %v160_v52 = vrot.slane %v159_v45, 1  ;;  %v116_v5 = vadd.f32 %v115_v62, %v114_v50  ;;  %v180_v9 = vadd.f32 %v236_v4, %v107_v3 }
  0x23   :  { %v140_v54 = vadd.f32 %v139_v48, %v138_v42  ;;  %v147_v55 = vadd.f32 %v146_v49, %v145_v43  ;;  %v125_v6 = vadd.f32 %v124_v1, %v123_v53  ;;  %v190_v19 = vstv %s328_s0  ;;  %s300_s0 = smov [#allocation6]  }
  0x24   :  { %v154_v56 = vadd.f32 %v153_v51, %v152_v44  ;;  %v161_v57 = vadd.f32 %v160_v52, %v159_v45  ;;  %v181_v12 = vadd.f32 %v236_v4, %v116_v5  ;;  %v183_v22 = vmax.f32 %v179_v8, 0.0  ;;  %s220_s20 = sshll.u32 %s300_s0, 4  ;;  %s221_s20 = int_to_ptr.vmem [resolvable:$true] %s220_s20 }
  0x25   :  { %v162_v60 = vmul.f32 0.5, %v140_v54  ;;  %v163_v61 = vmul.f32 0.5, %v147_v55  ;;  %v182_v15 = vadd.f32 %v236_v4, %v125_v6  ;;  %v184_v23 = vmax.f32 %v180_v9, 0.0 }
  0x26   :  { %v164_v63 = vmul.f32 0.5, %v154_v56  ;;  %v165_v0 = vmul.f32 0.5, %v161_v57  ;;  %v185_v25 = vmax.f32 %v181_v12, 0.0  ;;  %v188_v27 = vstv %s187_s19 }
  0x27   :  { %237 = vtanh.f32 %v162_v60  ;;  %v186_v30 = vmax.f32 %v182_v15, 0.0  ;;  %v189_v39 = vmul.f32 %v188_v27, %v30_v26 }
  0x28   :  { %239 = vtanh.f32 %v163_v61 }
  0x29   :  { %241 = vtanh.f32 %v164_v63 }
  0x2a   :  { %243 = vtanh.f32 %v165_v0 }
  0x2d   :  { %v238_v7 = vpop.eup %237 }
  0x2e   :  { %v240_v10 = vpop.eup %239  ;;  %v170_v11 = vadd.f32 1.0, %v238_v7 }
  0x2f   :  { %v242_v13 = vpop.eup %241  ;;  %v171_v14 = vadd.f32 1.0, %v240_v10 }
  0x30   :  { %v244_v16 = vpop.eup %243  ;;  %v172_v17 = vadd.f32 1.0, %v242_v13  ;;  %v174_v18 = vmul.f32 0.5, %v170_v11 }
  0x31   :  { %v173_v20 = vadd.f32 1.0, %v244_v16  ;;  %v175_v21 = vmul.f32 0.5, %v171_v14 }
  0x32   :  { %v176_v24 = vmul.f32 0.5, %v172_v17  ;;  %v191_v28 = vmul.f32 %v190_v19, %v174_v18 }
  0x33   :  { %v177_v29 = vmul.f32 0.5, %v173_v20  ;;  %v192_v31 = vmul.f32 %v190_v19, %v175_v21 }
  0x34   :  { %v193_v32 = vmul.f32 %v190_v19, %v176_v24  ;;  %v195_v34 = vmul.f32 %v191_v28, %v183_v22 }
  0x35   :  { %v194_v33 = vmul.f32 %v190_v19, %v177_v29  ;;  %v196_v35 = vmul.f32 %v192_v31, %v184_v23 }
  0x36   :  { %v197_v36 = vmul.f32 %v193_v32, %v185_v25 }
  0x37   :  { %v198_v37 = vmul.f32 %v194_v33, %v186_v30  ;;  %v203_v38 = vrot.slane %v196_v35, 7 }
  0x38   :  { %v206_v40 = vrot.slane %v197_v36, 6 }
  0x39   :  { %v205_v41 = vsel %vm204_vm0, %v203_v38, %v195_v34  ;;  %v209_v42 = vrot.slane %v198_v37, 5 }
  0x3a   :  { %v208_v43 = vsel %vm207_vm1, %v206_v40, %v205_v41 }
  0x3b   :  { %v211_v44 = vsel %vm210_vm2, %v209_v42, %v208_v43 }
  0x3c   :  { %v213_v45 = vadd.f32 %v211_v44, %v189_v39 }
  0x3e   :  { %214 = vst [vmem:[#allocation6] sm:$0xf] %v213_v45 }
  0x3f   :  { %225 = dma.vmem_to_hbm [thread:$0]  %s221_s20, 64, %s223_s23, [#allocation5]  }
  0x40   :  { %295 = dma.done.wait [#allocation5], 64  }
  0x41   :  { %296 = vsyncadd [#allocation5], 4294967232 }
  0x42   :  { %230 = vsyncpa [#allocation4], 1 }
  0x43   :  { %231 = vsyncpa [#allocation5], 1 }

</bundles_post_ra>
